<compile_context>
chip_gen: v6e
topology: v6e:2x2x1
jax: 0.10.0
libtpu: 0.0.40
codegen_flags: <defaults>
</compile_context>

<pallas_src>
import functools
import math

import jax
import jax.numpy as jnp
from jax.experimental import pallas as pl
from jax.experimental.pallas import tpu as pltpu


_GELU_C = math.sqrt(2.0 / math.pi)


def _round_up(n, m):
    return ((n + m - 1) // m) * m


def _is_pre_v6():
    """True for chips without bf16 VPU/EUP (<= v5); False for v6e/v7x."""
    try:
        kind = jax.devices()[0].device_kind.lower()
    except Exception:
        return True
    return any(tag in kind for tag in ("v2", "v3", "v4", "v5"))


def _mlp_kernel(x_ref, w_fc_ref, b_fc_ref, w_proj_ref, b_proj_ref, o_ref,
                acc_ref, *, act_dtype):
    """One (tm, C) row tile x one (th) hidden block of the fused MLP."""
    hj = pl.program_id(1)

    @pl.when(hj == 0)
    def _init():
        acc_ref[...] = jnp.zeros_like(acc_ref)

    # c_fc: bf16 operands on the MXU, f32 accumulation.
    x = x_ref[...].astype(jnp.bfloat16)
    h = jnp.dot(x, w_fc_ref[...], preferred_element_type=jnp.float32)
    h = (h + b_fc_ref[...]).astype(act_dtype)

    # NewGELU: 0.5*h*(1 + tanh(sqrt(2/pi)*(h + 0.044715*h^3))), factored form.
    inner = (_GELU_C * h) * (1.0 + 0.044715 * (h * h))
    g = (0.5 * h) * (1.0 + jnp.tanh(inner))

    # c_proj partial product for this hidden block, accumulated in f32.
    acc_ref[...] += jnp.dot(g.astype(jnp.bfloat16), w_proj_ref[...],
                            preferred_element_type=jnp.float32)

    @pl.when(hj == pl.num_programs(1) - 1)
    def _finalize():
        o_ref[...] = (acc_ref[...] + b_proj_ref[...]).astype(o_ref.dtype)


@functools.partial(jax.jit, static_argnames=("tm", "weight_buffers", "out_dtype"))
def mlp_forward(x, w_fc, b_fc, w_proj, b_proj, *, tm=None, weight_buffers=1,
                out_dtype=None):
    """Fused MLP forward.  x: [B, T, C]; weights stored (in, out): y = x@W + b."""
    B, T, C = x.shape
    H = w_fc.shape[1]                     # 4 * C
    M = B * T
    out_dtype = x.dtype if out_dtype is None else jnp.dtype(out_dtype)

    pre_v6 = _is_pre_v6()
    act_dtype = jnp.float32 if pre_v6 else jnp.bfloat16
    if tm is None:
        tm = 256 if pre_v6 else 512

    # Lane alignment: pad channel dims only when they are not 128-multiples
    # (GPT-2 sizes need no padding => no extra HBM pass over the activation).
    C_pad = _round_up(C, 128)
    H_pad = _round_up(H, 128)

    x2d = x.reshape(M, C)
    if C_pad != C:
        x2d = jnp.pad(x2d, ((0, 0), (0, C_pad - C)))

    w_fc_p = w_fc.astype(jnp.bfloat16)
    w_proj_p = w_proj.astype(jnp.bfloat16)
    b_fc_p = b_fc.astype(jnp.float32)
    b_proj_p = b_proj.astype(jnp.float32)
    if C_pad != C or H_pad != H:
        w_fc_p = jnp.pad(w_fc_p, ((0, C_pad - C), (0, H_pad - H)))
        w_proj_p = jnp.pad(w_proj_p, ((0, H_pad - H), (0, C_pad - C)))
        b_fc_p = jnp.pad(b_fc_p, (0, H_pad - H))
        b_proj_p = jnp.pad(b_proj_p, (0, C_pad - C))
    b_fc_p = b_fc_p.reshape(1, H_pad)
    b_proj_p = b_proj_p.reshape(1, C_pad)

    # Row tile: multiple of 8 sublanes; never pad M (ragged last tile is
    # masked by Pallas).  Keep >= 2 row tiles so v7x's second TC has work.
    tm = max(8, min(int(tm), _round_up(M, 8)))
    if M > 8:
        tm = min(tm, max(8, _round_up(pl.cdiv(M, 2), 8)))
    num_m = pl.cdiv(M, tm)

    # --- VMEM plan ---------------------------------------------------------
    try:
        vmem_cap = int(pltpu.get_tpu_info().vmem_capacity_bytes)
    except Exception:
        vmem_cap = 64 << 20               # conservative (v7x per-core VMEM)

    x_b = x2d.dtype.itemsize
    o_b = jnp.dtype(out_dtype).itemsize

    def vmem_need(th, wbuf):
        return (2 * tm * C_pad * x_b            # x row tiles (double-buffered)
                + 2 * tm * C_pad * o_b          # output tiles
                + wbuf * 2 * C_pad * th * 2     # W_fc + W_proj blocks (bf16)
                + wbuf * (th + C_pad) * 4       # biases (f32)
                + tm * C_pad * 4                # f32 accumulator scratch
                + 3 * tm * th * 4)              # h / g / GELU temporaries

    budget = int(0.8 * vmem_cap)
    wb = int(weight_buffers) if weight_buffers else 2
    th = H_pad                                   # resident weights if it fits
    while (vmem_need(th, wb if th == H_pad else 2) > budget
           and th % 256 == 0 and th > 512):
        th //= 2                                 # stream H blocks instead
    num_h = H_pad // th
    resident = num_h == 1

    vmem_limit = int(min(max(vmem_need(th, 2) * 6 // 5, 32 << 20),
                         int(0.9 * vmem_cap)))

    # Resident operands (constant index_map) are never re-DMA'd: the second
    # pipeline buffer is dead VMEM, so request single buffering for them.
    def wspec(shape, imap):
        if resident and weight_buffers:
            return pl.BlockSpec(shape, imap,
                                pipeline_mode=pl.Buffered(int(weight_buffers)))
        return pl.BlockSpec(shape, imap)

    cost = pl.CostEstimate(
        flops=4 * M * C_pad * H_pad,             # two matmuls
        transcendentals=M * H_pad,               # tanh
        bytes_accessed=int(M * C_pad * x_b + 2 * C_pad * H_pad * 2
                           + (H_pad + C_pad) * 4 + M * C_pad * o_b),
    )

    kernel = functools.partial(_mlp_kernel, act_dtype=act_dtype)

    out2d = pl.pallas_call(
        kernel,
        out_shape=jax.ShapeDtypeStruct((M, C_pad), out_dtype),
        grid_spec=pltpu.PrefetchScalarGridSpec(
            num_scalar_prefetch=0,
            grid=(num_m, num_h),
            in_specs=[
                pl.BlockSpec((tm, C_pad), lambda i, j: (i, 0)),   # x row tile
                wspec((C_pad, th), lambda i, j: (0, j)),          # W_fc
                wspec((1, th), lambda i, j: (0, j)),              # b_fc
                wspec((th, C_pad), lambda i, j: (j, 0)),          # W_proj
                wspec((1, C_pad), lambda i, j: (0, 0)),           # b_proj
            ],
            out_specs=pl.BlockSpec((tm, C_pad), lambda i, j: (i, 0)),
            scratch_shapes=[pltpu.VMEM((tm, C_pad), jnp.float32)],
        ),
        compiler_params=pltpu.CompilerParams(
            dimension_semantics=("parallel", "arbitrary"),
            vmem_limit_bytes=vmem_limit),
        cost_estimate=cost,
    )(x2d, w_fc_p, b_fc_p, w_proj_p, b_proj_p)

    if C_pad != C:
        out2d = out2d[:, :C]
    return out2d.reshape(B, T, C)


def _reference_mlp(x, w_fc, b_fc, w_proj, b_proj):
    """Pure f32 JAX reference mirroring the PyTorch forward."""
    h = x @ w_fc + b_fc
    g = 0.5 * h * (1.0 + jnp.tanh(_GELU_C * (h + 0.044715 * h ** 3)))
    return g @ w_proj + b_proj


if __name__ == "__main__":
    # Small shapes consistent with the module: batch=2, seq=8, n_embd=32.
    B, T, C = 2, 8, 32
    H = 4 * C

    key = jax.random.PRNGKey(0)
    kx, kwf, kbf, kwp, kbp = jax.random.split(key, 5)

    x = jax.random.normal(kx, (B, T, C), dtype=jnp.float32)

    # PyTorch Linear stores (out, in); we keep (in, out) so y = x @ W + b.
    w_fc = jax.random.normal(kwf, (C, H), dtype=jnp.float32) * 0.02
    b_fc = jax.random.normal(kbf, (H,), dtype=jnp.float32) * 0.02
    w_proj = jax.random.normal(kwp, (H, C), dtype=jnp.float32) * 0.02
    b_proj = jax.random.normal(kbp, (C,), dtype=jnp.float32) * 0.02

    try:
        out = jax.block_until_ready(mlp_forward(x, w_fc, b_fc, w_proj, b_proj))
    except Exception:
        # Fallback: default (double) buffering for the resident weight operands
        # in case pipeline_mode=pl.Buffered(1) is rejected by this Pallas build.
        out = jax.block_until_ready(
            mlp_forward(x, w_fc, b_fc, w_proj, b_proj, weight_buffers=None))

    ref = _reference_mlp(x, w_fc, b_fc, w_proj, b_proj)
    assert out.shape == (B, T, C)
    # bf16 matmul operands (and bf16 GELU on v6e+) vs pure-f32 reference.
    assert jnp.allclose(out, ref, atol=2e-2, rtol=2e-2), "mismatch vs reference"

    print("KERNEL_OK")
</pallas_src>

<mosaic_0001>
module attributes {stable_mosaic.version = 11 : i64} {
  func.func @_mlp_kernel(%arg0: i32, %arg1: i32, %arg2: memref<8x128xf32, #tpu.memory_space<vmem>>, %arg3: memref<128x128xbf16, #tpu.memory_space<vmem>>, %arg4: memref<1x128xf32, #tpu.memory_space<vmem>>, %arg5: memref<128x128xbf16, #tpu.memory_space<vmem>>, %arg6: memref<1x128xf32, #tpu.memory_space<vmem>>, %arg7: memref<8x128xf32, #tpu.memory_space<vmem>>, %arg8: memref<8x128xf32, #tpu.memory_space<vmem>>) attributes {dimension_semantics = [#tpu.dimension_semantics<parallel>, #tpu.dimension_semantics<arbitrary>], iteration_bounds = array<i64: 2, 1>, scalar_prefetch = 0 : i64, scratch_operands = 1 : i64, tpu.core_type = #tpu.core_type<tc>, window_params = [{transform_indices = @transform_0, window_bounds = array<i64: 8, 128>}, {pipeline_mode = #tpu.pipeline_mode<synchronous>, transform_indices = @transform_1, window_bounds = array<i64: 128, 128>}, {pipeline_mode = #tpu.pipeline_mode<synchronous>, transform_indices = @transform_2, window_bounds = array<i64: 1, 128>}, {pipeline_mode = #tpu.pipeline_mode<synchronous>, transform_indices = @transform_3, window_bounds = array<i64: 128, 128>}, {pipeline_mode = #tpu.pipeline_mode<synchronous>, transform_indices = @transform_4, window_bounds = array<i64: 1, 128>}, {transform_indices = @transform_5, window_bounds = array<i64: 8, 128>}]} {
    %c0_i32 = arith.constant 0 : i32
    %0 = arith.cmpi eq, %arg1, %c0_i32 : i32
    %1 = arith.extui %0 : i1 to i32
    %c0_i32_0 = arith.constant 0 : i32
    %2 = arith.cmpi ne, %1, %c0_i32_0 : i32
    scf.if %2 {
      %cst_20 = arith.constant 0.000000e+00 : f32
      %33 = vector.broadcast %cst_20 : f32 to vector<8x128xf32>
      %c0_21 = arith.constant 0 : index
      %c0_22 = arith.constant 0 : index
      %34 = vector.load %arg8[%c0_21, %c0_22] : memref<8x128xf32, #tpu.memory_space<vmem>>, vector<8x128xf32>
      tpu.vector_store %arg8[%c0_21, %c0_22], %33 {strides = array<i32>} : memref<8x128xf32, #tpu.memory_space<vmem>>, vector<8x128xf32>,
    } else {
    }
    %c0 = arith.constant 0 : index
    %c0_1 = arith.constant 0 : index
    %3 = vector.load %arg2[%c0, %c0_1] : memref<8x128xf32, #tpu.memory_space<vmem>>, vector<8x128xf32>
    %4 = arith.truncf %3 : vector<8x128xf32> to vector<8x128xbf16>
    %c0_2 = arith.constant 0 : index
    %c0_3 = arith.constant 0 : index
    %5 = vector.load %arg3[%c0_2, %c0_3] : memref<128x128xbf16, #tpu.memory_space<vmem>>, vector<128x128xbf16>
    %cst = arith.constant dense<0.000000e+00> : vector<8x128xf32>
    %6 = tpu.matmul %4, %5, %cst {dimension_numbers = #tpu.dot_dimension_numbers<[1], [0], [0], [1], [0, 0, 1, 1], [], []>} : vector<8x128xbf16>, vector<128x128xbf16>, vector<8x128xf32> -> vector<8x128xf32>
    %c0_4 = arith.constant 0 : index
    %c0_5 = arith.constant 0 : index
    %7 = vector.load %arg4[%c0_4, %c0_5] : memref<1x128xf32, #tpu.memory_space<vmem>>, vector<1x128xf32>
    %8 = vector.broadcast %7 : vector<1x128xf32> to vector<8x128xf32>
    %9 = arith.addf %6, %8 : vector<8x128xf32>
    %10 = arith.truncf %9 : vector<8x128xf32> to vector<8x128xbf16>
    %cst_6 = arith.constant 7.968750e-01 : bf16
    %11 = vector.broadcast %cst_6 : bf16 to vector<8x128xbf16>
    %12 = arith.mulf %11, %10 : vector<8x128xbf16>
    %13 = arith.mulf %10, %10 : vector<8x128xbf16>
    %cst_7 = arith.constant 4.467770e-02 : bf16
    %14 = vector.broadcast %cst_7 : bf16 to vector<8x128xbf16>
    %15 = arith.mulf %14, %13 : vector<8x128xbf16>
    %cst_8 = arith.constant 1.000000e+00 : bf16
    %16 = vector.broadcast %cst_8 : bf16 to vector<8x128xbf16>
    %17 = arith.addf %16, %15 : vector<8x128xbf16>
    %18 = arith.mulf %12, %17 : vector<8x128xbf16>
    %cst_9 = arith.constant 5.000000e-01 : bf16
    %19 = vector.broadcast %cst_9 : bf16 to vector<8x128xbf16>
    %20 = arith.mulf %19, %10 : vector<8x128xbf16>
    %21 = math.tanh %18 : vector<8x128xbf16>
    %cst_10 = arith.constant 1.000000e+00 : bf16
    %22 = vector.broadcast %cst_10 : bf16 to vector<8x128xbf16>
    %23 = arith.addf %22, %21 : vector<8x128xbf16>
    %24 = arith.mulf %20, %23 : vector<8x128xbf16>
    %c0_11 = arith.constant 0 : index
    %c0_12 = arith.constant 0 : index
    %25 = vector.load %arg8[%c0_11, %c0_12] : memref<8x128xf32, #tpu.memory_space<vmem>>, vector<8x128xf32>
    %c0_13 = arith.constant 0 : index
    %c0_14 = arith.constant 0 : index
    %26 = vector.load %arg5[%c0_13, %c0_14] : memref<128x128xbf16, #tpu.memory_space<vmem>>, vector<128x128xbf16>
    %cst_15 = arith.constant dense<0.000000e+00> : vector<8x128xf32>
    %27 = tpu.matmul %24, %26, %cst_15 {dimension_numbers = #tpu.dot_dimension_numbers<[1], [0], [0], [1], [0, 0, 1, 1], [], []>} : vector<8x128xbf16>, vector<128x128xbf16>, vector<8x128xf32> -> vector<8x128xf32>
    %28 = arith.addf %25, %27 : vector<8x128xf32>
    %c0_16 = arith.constant 0 : index
    %c0_17 = arith.constant 0 : index
    %29 = vector.load %arg8[%c0_16, %c0_17] : memref<8x128xf32, #tpu.memory_space<vmem>>, vector<8x128xf32>
    tpu.vector_store %arg8[%c0_16, %c0_17], %28 {strides = array<i32>} : memref<8x128xf32, #tpu.memory_space<vmem>>, vector<8x128xf32>,
    %c0_i32_18 = arith.constant 0 : i32
    %30 = arith.cmpi eq, %arg1, %c0_i32_18 : i32
    %31 = arith.extui %30 : i1 to i32
    %c0_i32_19 = arith.constant 0 : i32
    %32 = arith.cmpi ne, %31, %c0_i32_19 : i32
    scf.if %32 {
      %c0_20 = arith.constant 0 : index
      %c0_21 = arith.constant 0 : index
      %33 = vector.load %arg8[%c0_20, %c0_21] : memref<8x128xf32, #tpu.memory_space<vmem>>, vector<8x128xf32>
      %c0_22 = arith.constant 0 : index
      %c0_23 = arith.constant 0 : index
      %34 = vector.load %arg6[%c0_22, %c0_23] : memref<1x128xf32, #tpu.memory_space<vmem>>, vector<1x128xf32>
      %35 = vector.broadcast %34 : vector<1x128xf32> to vector<8x128xf32>
      %36 = arith.addf %33, %35 : vector<8x128xf32>
      %c0_24 = arith.constant 0 : index
      %c0_25 = arith.constant 0 : index
      %37 = vector.load %arg7[%c0_24, %c0_25] : memref<8x128xf32, #tpu.memory_space<vmem>>, vector<8x128xf32>
      tpu.vector_store %arg7[%c0_24, %c0_25], %36 {strides = array<i32>} : memref<8x128xf32, #tpu.memory_space<vmem>>, vector<8x128xf32>,
    } else {
    }
    return
  }
  func.func @transform_0(%arg0: i32, %arg1: i32) -> (i32, i32) {
    %c0_i32 = arith.constant 0 : i32
    %c0_i32_0 = arith.constant 0 : i32
    return %arg0, %c0_i32 : i32, i32
  }
  func.func @transform_1(%arg0: i32, %arg1: i32) -> (i32, i32) {
    %c0_i32 = arith.constant 0 : i32
    %c0_i32_0 = arith.constant 0 : i32
    return %c0_i32, %arg1 : i32, i32
  }
  func.func @transform_2(%arg0: i32, %arg1: i32) -> (i32, i32) {
    %c0_i32 = arith.constant 0 : i32
    %c0_i32_0 = arith.constant 0 : i32
    return %c0_i32, %arg1 : i32, i32
  }
  func.func @transform_3(%arg0: i32, %arg1: i32) -> (i32, i32) {
    %c0_i32 = arith.constant 0 : i32
    %c0_i32_0 = arith.constant 0 : i32
    return %arg1, %c0_i32 : i32, i32
  }
  func.func @transform_4(%arg0: i32, %arg1: i32) -> (i32, i32) {
    %c0_i32 = arith.constant 0 : i32
    %c0_i32_0 = arith.constant 0 : i32
    %c0_i32_1 = arith.constant 0 : i32
    return %c0_i32, %c0_i32_0 : i32, i32
  }
  func.func @transform_5(%arg0: i32, %arg1: i32) -> (i32, i32) {
    %c0_i32 = arith.constant 0 : i32
    %c0_i32_0 = arith.constant 0 : i32
    return %arg0, %c0_i32 : i32, i32
  }
}

module attributes {stable_mosaic.version = 11 : i64} {
  func.func @_mlp_kernel(%arg0: i32, %arg1: i32, %arg2: memref<8x128xf32, #tpu.memory_space<vmem>>, %arg3: memref<128x128xbf16, #tpu.memory_space<vmem>>, %arg4: memref<1x128xf32, #tpu.memory_space<vmem>>, %arg5: memref<128x128xbf16, #tpu.memory_space<vmem>>, %arg6: memref<1x128xf32, #tpu.memory_space<vmem>>, %arg7: memref<8x128xf32, #tpu.memory_space<vmem>>, %arg8: memref<8x128xf32, #tpu.memory_space<vmem>>) attributes {dimension_semantics = [#tpu.dimension_semantics<parallel>, #tpu.dimension_semantics<arbitrary>], iteration_bounds = array<i64: 2, 1>, scalar_prefetch = 0 : i64, scratch_operands = 1 : i64, tpu.core_type = #tpu.core_type<tc>, window_params = [{transform_indices = @transform_0, window_bounds = array<i64: 8, 128>}, {transform_indices = @transform_1, window_bounds = array<i64: 128, 128>}, {transform_indices = @transform_2, window_bounds = array<i64: 1, 128>}, {transform_indices = @transform_3, window_bounds = array<i64: 128, 128>}, {pipeline_mode = #tpu.pipeline_mode<synchronous>, transform_indices = @transform_4, window_bounds = array<i64: 1, 128>}, {transform_indices = @transform_5, window_bounds = array<i64: 8, 128>}]} {
    %c0_i32 = arith.constant 0 : i32
    %0 = arith.cmpi eq, %arg1, %c0_i32 : i32
    %1 = arith.extui %0 : i1 to i32
    %c0_i32_0 = arith.constant 0 : i32
    %2 = arith.cmpi ne, %1, %c0_i32_0 : i32
    scf.if %2 {
      %cst_20 = arith.constant 0.000000e+00 : f32
      %33 = vector.broadcast %cst_20 : f32 to vector<8x128xf32>
      %c0_21 = arith.constant 0 : index
      %c0_22 = arith.constant 0 : index
      %34 = vector.load %arg8[%c0_21, %c0_22] : memref<8x128xf32, #tpu.memory_space<vmem>>, vector<8x128xf32>
      tpu.vector_store %arg8[%c0_21, %c0_22], %33 {strides = array<i32>} : memref<8x128xf32, #tpu.memory_space<vmem>>, vector<8x128xf32>,
    } else {
    }
    %c0 = arith.constant 0 : index
    %c0_1 = arith.constant 0 : index
    %3 = vector.load %arg2[%c0, %c0_1] : memref<8x128xf32, #tpu.memory_space<vmem>>, vector<8x128xf32>
    %4 = arith.truncf %3 : vector<8x128xf32> to vector<8x128xbf16>
    %c0_2 = arith.constant 0 : index
    %c0_3 = arith.constant 0 : index
    %5 = vector.load %arg3[%c0_2, %c0_3] : memref<128x128xbf16, #tpu.memory_space<vmem>>, vector<128x128xbf16>
    %cst = arith.constant dense<0.000000e+00> : vector<8x128xf32>
    %6 = tpu.matmul %4, %5, %cst {dimension_numbers = #tpu.dot_dimension_numbers<[1], [0], [0], [1], [0, 0, 1, 1], [], []>} : vector<8x128xbf16>, vector<128x128xbf16>, vector<8x128xf32> -> vector<8x128xf32>
    %c0_4 = arith.constant 0 : index
    %c0_5 = arith.constant 0 : index
    %7 = vector.load %arg4[%c0_4, %c0_5] : memref<1x128xf32, #tpu.memory_space<vmem>>, vector<1x128xf32>
    %8 = vector.broadcast %7 : vector<1x128xf32> to vector<8x128xf32>
    %9 = arith.addf %6, %8 : vector<8x128xf32>
    %10 = arith.truncf %9 : vector<8x128xf32> to vector<8x128xbf16>
    %cst_6 = arith.constant 7.968750e-01 : bf16
    %11 = vector.broadcast %cst_6 : bf16 to vector<8x128xbf16>
    %12 = arith.mulf %11, %10 : vector<8x128xbf16>
    %13 = arith.mulf %10, %10 : vector<8x128xbf16>
    %cst_7 = arith.constant 4.467770e-02 : bf16
    %14 = vector.broadcast %cst_7 : bf16 to vector<8x128xbf16>
    %15 = arith.mulf %14, %13 : vector<8x128xbf16>
    %cst_8 = arith.constant 1.000000e+00 : bf16
    %16 = vector.broadcast %cst_8 : bf16 to vector<8x128xbf16>
    %17 = arith.addf %16, %15 : vector<8x128xbf16>
    %18 = arith.mulf %12, %17 : vector<8x128xbf16>
    %cst_9 = arith.constant 5.000000e-01 : bf16
    %19 = vector.broadcast %cst_9 : bf16 to vector<8x128xbf16>
    %20 = arith.mulf %19, %10 : vector<8x128xbf16>
    %21 = math.tanh %18 : vector<8x128xbf16>
    %cst_10 = arith.constant 1.000000e+00 : bf16
    %22 = vector.broadcast %cst_10 : bf16 to vector<8x128xbf16>
    %23 = arith.addf %22, %21 : vector<8x128xbf16>
    %24 = arith.mulf %20, %23 : vector<8x128xbf16>
    %c0_11 = arith.constant 0 : index
    %c0_12 = arith.constant 0 : index
    %25 = vector.load %arg8[%c0_11, %c0_12] : memref<8x128xf32, #tpu.memory_space<vmem>>, vector<8x128xf32>
    %c0_13 = arith.constant 0 : index
    %c0_14 = arith.constant 0 : index
    %26 = vector.load %arg5[%c0_13, %c0_14] : memref<128x128xbf16, #tpu.memory_space<vmem>>, vector<128x128xbf16>
    %cst_15 = arith.constant dense<0.000000e+00> : vector<8x128xf32>
    %27 = tpu.matmul %24, %26, %cst_15 {dimension_numbers = #tpu.dot_dimension_numbers<[1], [0], [0], [1], [0, 0, 1, 1], [], []>} : vector<8x128xbf16>, vector<128x128xbf16>, vector<8x128xf32> -> vector<8x128xf32>
    %28 = arith.addf %25, %27 : vector<8x128xf32>
    %c0_16 = arith.constant 0 : index
    %c0_17 = arith.constant 0 : index
    %29 = vector.load %arg8[%c0_16, %c0_17] : memref<8x128xf32, #tpu.memory_space<vmem>>, vector<8x128xf32>
    tpu.vector_store %arg8[%c0_16, %c0_17], %28 {strides = array<i32>} : memref<8x128xf32, #tpu.memory_space<vmem>>, vector<8x128xf32>,
    %c0_i32_18 = arith.constant 0 : i32
    %30 = arith.cmpi eq, %arg1, %c0_i32_18 : i32
    %31 = arith.extui %30 : i1 to i32
    %c0_i32_19 = arith.constant 0 : i32
    %32 = arith.cmpi ne, %31, %c0_i32_19 : i32
    scf.if %32 {
      %c0_20 = arith.constant 0 : index
      %c0_21 = arith.constant 0 : index
      %33 = vector.load %arg8[%c0_20, %c0_21] : memref<8x128xf32, #tpu.memory_space<vmem>>, vector<8x128xf32>
      %c0_22 = arith.constant 0 : index
      %c0_23 = arith.constant 0 : index
      %34 = vector.load %arg6[%c0_22, %c0_23] : memref<1x128xf32, #tpu.memory_space<vmem>>, vector<1x128xf32>
      %35 = vector.broadcast %34 : vector<1x128xf32> to vector<8x128xf32>
      %36 = arith.addf %33, %35 : vector<8x128xf32>
      %c0_24 = arith.constant 0 : index
      %c0_25 = arith.constant 0 : index
      %37 = vector.load %arg7[%c0_24, %c0_25] : memref<8x128xf32, #tpu.memory_space<vmem>>, vector<8x128xf32>
      tpu.vector_store %arg7[%c0_24, %c0_25], %36 {strides = array<i32>} : memref<8x128xf32, #tpu.memory_space<vmem>>, vector<8x128xf32>,
    } else {
    }
    return
  }
  func.func @transform_0(%arg0: i32, %arg1: i32) -> (i32, i32) {
    %c0_i32 = arith.constant 0 : i32
    %c0_i32_0 = arith.constant 0 : i32
    return %arg0, %c0_i32 : i32, i32
  }
  func.func @transform_1(%arg0: i32, %arg1: i32) -> (i32, i32) {
    %c0_i32 = arith.constant 0 : i32
    %c0_i32_0 = arith.constant 0 : i32
    return %c0_i32, %arg1 : i32, i32
  }
  func.func @transform_2(%arg0: i32, %arg1: i32) -> (i32, i32) {
    %c0_i32 = arith.constant 0 : i32
    %c0_i32_0 = arith.constant 0 : i32
    return %c0_i32, %arg1 : i32, i32
  }
  func.func @transform_3(%arg0: i32, %arg1: i32) -> (i32, i32) {
    %c0_i32 = arith.constant 0 : i32
    %c0_i32_0 = arith.constant 0 : i32
    return %arg1, %c0_i32 : i32, i32
  }
  func.func @transform_4(%arg0: i32, %arg1: i32) -> (i32, i32) {
    %c0_i32 = arith.constant 0 : i32
    %c0_i32_0 = arith.constant 0 : i32
    %c0_i32_1 = arith.constant 0 : i32
    return %c0_i32, %c0_i32_0 : i32, i32
  }
  func.func @transform_5(%arg0: i32, %arg1: i32) -> (i32, i32) {
    %c0_i32 = arith.constant 0 : i32
    %c0_i32_0 = arith.constant 0 : i32
    return %arg0, %c0_i32 : i32, i32
  }
}

</mosaic_0001>

<bundles_post_ra>
// kernel: mlp_forward.1
= control target key start
LH: loop header
LB: loop body
LE: loop exit
PB: predicated region body
PF: predicated region fallthrough
CT: control target
= control target key end

     0   :  { %s830_s18 = smov 0   ;;  %s832_s19 = smov 0   ;;  %s928_s0 = inlined_call_operand.vmem [shape: f32[16,128], index: 0, kind: input, shape index: {}]   ;;  %s929_s1 = inlined_call_operand.vmem [shape: bf16[128,128], index: 1, kind: input, shape index: {}]   ;;  %s930_s2 = inlined_call_operand.vmem [shape: f32[1,128], index: 2, kind: input, shape index: {}]   ;;  %s931_s3 = inlined_call_operand.vmem [shape: bf16[128,128], index: 3, kind: input, shape index: {}]   ;;  %s932_s4 = inlined_call_operand.vmem [shape: f32[1,128], index: 4, kind: input, shape index: {}]   ;;  %s933_s5 = inlined_call_operand.vmem [shape: f32[16,128], index: 5, kind: output, shape index: {}]  }
   0x1   :  { %s834_s20 = smov 0  }
   0x2 LB: > { %s27_s21 = sadd.s32 1, %s792_s19  ;;  %p649_p0 = scmp.ge.s32.totalorder %s796_s20, 1  ;;  %s796_s20 = sphi %s834_s20, %s15_s20   ;;  %s792_s19 = sphi %s832_s19, %s935_s19   ;;  %s788_s18 = sphi %s830_s18, %s934_s18  }
   0x3   : > { %p29_p1 = scmp.ge.s32.totalorder %s27_s21, 2  ;;  %p226_p2 = scmp.lt.s32.totalorder %s796_s20, 3 }
   0x5   : > { %s937_s21 = smov (%p29_p1, %s27_s21), 0  ;;  %p227_p3 = pnand %p649_p0, %p226_p2 }
   0x6   : > { %p264_p4 = scmp.lt.s32.totalorder (!%p227_p3), %s788_s18, 1 }
   0x7   : > { %230 = sbr.rel (%p227_p3) target bundleno = 468 (0x1d4), region = 40 }
   0xc   : > { %v756_v0 = vld [vmem:[%s929_s1 + $0x38] sm:$0xff]   ;;  %v798_v1 = vmov 0.0   ;;  %v757_v2 = vld [vmem:[%s929_s1 + $0x30] sm:$0xff]   ;;  %vm799_vm0 = vmmov 0   ;;  %v758_v3 = vld [vmem:[%s929_s1 + $0x28] sm:$0xff]   ;;  %s939_s18 = smov (!%p264_p4, %s788_s18), 1 }
   0xd   : > { %690 = vmatprep.subr.bf16.mxu0 %v798_v1  ;;  %710 = vmatprep.subr.bf16.mxu1 %v798_v1  ;;  %v759_v4 = vld [vmem:[%s929_s1 + $0x20] sm:$0xff]   ;;  %v760_v5 = vld [vmem:[%s929_s1 + $0x18] sm:$0xff]   ;;  %v761_v6 = vld [vmem:[%s929_s1 + $0x10] sm:$0xff]   ;;  %s650_s9 = sshll.u32 %s939_s18, 3 }
   0xe   : > { %691 = vmatpush3.bf16.msra.mxu0 %v756_v0  ;;  %706 = vmatprep.mubr.msk.bf16.mxu0 %vm799_vm0, %v798_v1  ;;  %v762_v7 = vld [vmem:[%s929_s1 + $0x8] sm:$0xff]   ;;  %s267_s14 = scalar_lea.vmem %s928_s0, %s650_s9  ;;  %v763_v8 = vld [vmem:[%s929_s1] sm:$0xff]   ;;  %v764_v11 = vld [vmem:[%s931_s3 + $0x38] sm:$0xff]   ;;  %s284_s23 = scalar_lea.vmem %s933_s5, %s650_s9 }
   0xf   : > { %692 = vmatprep.subr.bf16.mxu0 %v798_v1  ;;  %726 = vmatprep.mubr.msk.bf16.mxu1 %vm799_vm0, %v798_v1  ;;  %v295_v9 = vld [vmem:[%s267_s14] sm:$0xff]  ;;  %v765_v12 = vld [vmem:[%s931_s3 + $0x30] sm:$0xff]   ;;  %v766_v13 = vld [vmem:[%s931_s3 + $0x28] sm:$0xff]  }
  0x10   : > { %v296_v10 = vpack.c.bf16 %v295_v9, %v295_v9  ;;  %711 = vmatpush3.bf16.msra.mxu1 %v764_v11  ;;  %v767_v14 = vld [vmem:[%s931_s3 + $0x20] sm:$0xff]   ;;  %v768_v15 = vld [vmem:[%s931_s3 + $0x18] sm:$0xff]   ;;  %v769_v16 = vld [vmem:[%s931_s3 + $0x10] sm:$0xff]  }
  0x11   : > { %712 = vmatprep.subr.bf16.mxu1 %v798_v1  ;;  %v770_v17 = vld [vmem:[%s931_s3 + $0x8] sm:$0xff]   ;;  %v771_v18 = vld [vmem:[%s931_s3] sm:$0xff]  }
  0x12   : > { %693 = vmatpush3.bf16.msra.mxu0 %v757_v2  ;;  %v652_v19 = vld [vmem:[%s930_s2] ss:$0 sm:$0xff] }
  0x13   : > { %694 = vmatprep.subr.bf16.mxu0 %v798_v1  ;;  %v669_v35 = vld [vmem:[%s932_s4] ss:$0 sm:$0xff] }
  0x14   : > { %713 = vmatpush3.bf16.msra.mxu1 %v765_v12 }
  0x15   : > { %714 = vmatprep.subr.bf16.mxu1 %v798_v1 }
  0x16   : > { %695 = vmatpush3.bf16.msra.mxu0 %v758_v3 }
  0x17   : > { %696 = vmatprep.subr.bf16.mxu0 %v798_v1 }
  0x18   : > { %715 = vmatpush3.bf16.msra.mxu1 %v766_v13 }
  0x19   : > { %716 = vmatprep.subr.bf16.mxu1 %v798_v1 }
  0x1a   : > { %697 = vmatpush3.bf16.msra.mxu0 %v759_v4 }
  0x1b   : > { %698 = vmatprep.subr.bf16.mxu0 %v798_v1 }
  0x1c   : > { %717 = vmatpush3.bf16.msra.mxu1 %v767_v14 }
  0x1d   : > { %718 = vmatprep.subr.bf16.mxu1 %v798_v1 }
  0x1e   : > { %699 = vmatpush3.bf16.msra.mxu0 %v760_v5 }
  0x1f   : > { %700 = vmatprep.subr.bf16.mxu0 %v798_v1 }
  0x20   : > { %719 = vmatpush3.bf16.msra.mxu1 %v768_v15 }
  0x21   : > { %720 = vmatprep.subr.bf16.mxu1 %v798_v1 }
  0x22   : > { %701 = vmatpush3.bf16.msra.mxu0 %v761_v6 }
  0x23   : > { %702 = vmatprep.subr.bf16.mxu0 %v798_v1 }
  0x24   : > { %721 = vmatpush3.bf16.msra.mxu1 %v769_v16 }
  0x25   : > { %722 = vmatprep.subr.bf16.mxu1 %v798_v1 }
  0x26   : > { %703 = vmatpush3.bf16.msra.mxu0 %v762_v7 }
  0x27   : > { %704 = vmatprep.subr.bf16.mxu0 %v798_v1 }
  0x28   : > { %723 = vmatpush3.bf16.msra.mxu1 %v770_v17 }
  0x29   : > { %724 = vmatprep.subr.bf16.mxu1 %v798_v1 }
  0x2a   : > { %705 = vmatpush3.bf16.msra.mxu0 %v763_v8 }
  0x2c   : > { %725 = vmatpush3.bf16.msra.mxu1 %v771_v18 }
  0x2d   : > { %707 = vmatmul.mubr.bf16.vlgmr.msra.gmra.mxu0 %v296_v10 }
  0xed   : > { %v402_v20 = vpop.f32.mrf.mxu0 }
  0xee   : > { %v403_v21 = vadd.f32 %v652_v19, %v402_v20 }
  0xef   : > { %v708_v22 = vpop.f32.mrf.mxu0 }
  0xf0   : > { %v408_v23 = vpack.c.bf16 %v403_v21, %v403_v21 }
  0xf1   : > { %v405_v24 = vpop.f32.mrf.mxu0 }
  0xf2   : > { %v410_v25 = vmul.bf16 %v408_v23, %v408_v23  ;;  %v409_v28 = vmul.bf16 1061961548, %v408_v23  ;;  %v414_v32 = vmul.bf16 1056980736, %v408_v23 }
  0xf3   : > { %v709_v26 = vpop.f32.mrf.mxu0 }
  0xf4   : > { %v411_v27 = vmul.bf16 1027030327, %v410_v25 }
  0xf6   : > { %v412_v29 = vadd.bf16 1065369472, %v411_v27 }
  0xf8   : > { %v413_v30 = vmul.bf16 %v412_v29, %v409_v28 }
  0xfa   : > { %772 = vtanh.bf16 %v413_v30 }
 0x108   : > { %v773_v31 = vpop.eup %772 }
 0x109   : > { %v416_v33 = vadd.bf16 1065369472, %v773_v31 }
 0x10b   : > { %v417_v34 = vmul.bf16 %v416_v33, %v414_v32 }
 0x10d   : > { %727 = vmatmul.mubr.bf16.vlgmr.msra.gmra.mxu1 %v417_v34 }
 0x1cd   : > { %v517_v36 = vpop.f32.mrf.mxu1 }
 0x1ce   : > { %v536_v37 = vadd.f32 %v669_v35, %v517_v36 }
 0x1cf   : > { %v728_v38 = vpop.f32.mrf.mxu1 }
 0x1d0   : > { %537 = vst [vmem:[%s284_s23] sm:$0xff] %v536_v37 }
 0x1d1   : > { %v520_v39 = vpop.f32.mrf.mxu1 }
 0x1d3   : > { %v729_v40 = vpop.f32.mrf.mxu1 }
 0x1d4 PF: > { %s15_s20 = sadd.s32 1, %s796_s20   ;;  %s934_s18 = smov %s792_s19 }
 0x1d5   : > { %p12_p5 = scmp.ge.s32.totalorder %s15_s20, 4   ;;  %s935_s19 = smov %s937_s21 }
 0x1d7   :  { %14 = sbr.rel (!%p12_p5) target bundleno = 2 (0x2), region = 87 }

// kernel: mlp_forward.1
= control target key start
LH: loop header
LB: loop body
LE: loop exit
PB: predicated region body
PF: predicated region fallthrough
CT: control target
= control target key end

     0   :  { %s830_s18 = smov 0   ;;  %s832_s19 = smov 0   ;;  %s928_s0 = inlined_call_operand.vmem [shape: f32[16,128], index: 0, kind: input, shape index: {}]   ;;  %s929_s1 = inlined_call_operand.vmem [shape: bf16[128,128], index: 1, kind: input, shape index: {}]   ;;  %s930_s2 = inlined_call_operand.vmem [shape: f32[1,128], index: 2, kind: input, shape index: {}]   ;;  %s931_s3 = inlined_call_operand.vmem [shape: bf16[128,128], index: 3, kind: input, shape index: {}]   ;;  %s932_s4 = inlined_call_operand.vmem [shape: f32[1,128], index: 4, kind: input, shape index: {}]   ;;  %s933_s5 = inlined_call_operand.vmem [shape: f32[16,128], index: 5, kind: output, shape index: {}]  }
   0x1   :  { %s834_s20 = smov 0  }
   0x2 LB: > { %s27_s21 = sadd.s32 1, %s792_s19  ;;  %p649_p0 = scmp.ge.s32.totalorder %s796_s20, 1  ;;  %s796_s20 = sphi %s834_s20, %s15_s20   ;;  %s792_s19 = sphi %s832_s19, %s935_s19   ;;  %s788_s18 = sphi %s830_s18, %s934_s18  }
   0x3   : > { %p29_p1 = scmp.ge.s32.totalorder %s27_s21, 2  ;;  %p226_p2 = scmp.lt.s32.totalorder %s796_s20, 3 }
   0x5   : > { %s937_s21 = smov (%p29_p1, %s27_s21), 0  ;;  %p227_p3 = pnand %p649_p0, %p226_p2 }
   0x6   : > { %p264_p4 = scmp.lt.s32.totalorder (!%p227_p3), %s788_s18, 1 }
   0x7   : > { %230 = sbr.rel (%p227_p3) target bundleno = 468 (0x1d4), region = 40 }
   0xc   : > { %v756_v0 = vld [vmem:[%s929_s1 + $0x38] sm:$0xff]   ;;  %v798_v1 = vmov 0.0   ;;  %v757_v2 = vld [vmem:[%s929_s1 + $0x30] sm:$0xff]   ;;  %vm799_vm0 = vmmov 0   ;;  %v758_v3 = vld [vmem:[%s929_s1 + $0x28] sm:$0xff]   ;;  %s939_s18 = smov (!%p264_p4, %s788_s18), 1 }
   0xd   : > { %690 = vmatprep.subr.bf16.mxu0 %v798_v1  ;;  %710 = vmatprep.subr.bf16.mxu1 %v798_v1  ;;  %v759_v4 = vld [vmem:[%s929_s1 + $0x20] sm:$0xff]   ;;  %v760_v5 = vld [vmem:[%s929_s1 + $0x18] sm:$0xff]   ;;  %v761_v6 = vld [vmem:[%s929_s1 + $0x10] sm:$0xff]   ;;  %s650_s9 = sshll.u32 %s939_s18, 3 }
   0xe   : > { %691 = vmatpush3.bf16.msra.mxu0 %v756_v0  ;;  %706 = vmatprep.mubr.msk.bf16.mxu0 %vm799_vm0, %v798_v1  ;;  %v762_v7 = vld [vmem:[%s929_s1 + $0x8] sm:$0xff]   ;;  %s267_s14 = scalar_lea.vmem %s928_s0, %s650_s9  ;;  %v763_v8 = vld [vmem:[%s929_s1] sm:$0xff]   ;;  %v764_v11 = vld [vmem:[%s931_s3 + $0x38] sm:$0xff]   ;;  %s284_s23 = scalar_lea.vmem %s933_s5, %s650_s9 }
   0xf   : > { %692 = vmatprep.subr.bf16.mxu0 %v798_v1  ;;  %726 = vmatprep.mubr.msk.bf16.mxu1 %vm799_vm0, %v798_v1  ;;  %v295_v9 = vld [vmem:[%s267_s14] sm:$0xff]  ;;  %v765_v12 = vld [vmem:[%s931_s3 + $0x30] sm:$0xff]   ;;  %v766_v13 = vld [vmem:[%s931_s3 + $0x28] sm:$0xff]  }
  0x10   : > { %v296_v10 = vpack.c.bf16 %v295_v9, %v295_v9  ;;  %711 = vmatpush3.bf16.msra.mxu1 %v764_v11  ;;  %v767_v14 = vld [vmem:[%s931_s3 + $0x20] sm:$0xff]   ;;  %v768_v15 = vld [vmem:[%s931_s3 + $0x18] sm:$0xff]   ;;  %v769_v16 = vld [vmem:[%s931_s3 + $0x10] sm:$0xff]  }
  0x11   : > { %712 = vmatprep.subr.bf16.mxu1 %v798_v1  ;;  %v770_v17 = vld [vmem:[%s931_s3 + $0x8] sm:$0xff]   ;;  %v771_v18 = vld [vmem:[%s931_s3] sm:$0xff]  }
  0x12   : > { %693 = vmatpush3.bf16.msra.mxu0 %v757_v2  ;;  %v652_v19 = vld [vmem:[%s930_s2] ss:$0 sm:$0xff] }
  0x13   : > { %694 = vmatprep.subr.bf16.mxu0 %v798_v1  ;;  %v669_v35 = vld [vmem:[%s932_s4] ss:$0 sm:$0xff] }
  0x14   : > { %713 = vmatpush3.bf16.msra.mxu1 %v765_v12 }
  0x15   : > { %714 = vmatprep.subr.bf16.mxu1 %v798_v1 }
  0x16   : > { %695 = vmatpush3.bf16.msra.mxu0 %v758_v3 }
  0x17   : > { %696 = vmatprep.subr.bf16.mxu0 %v798_v1 }
  0x18   : > { %715 = vmatpush3.bf16.msra.mxu1 %v766_v13 }
  0x19   : > { %716 = vmatprep.subr.bf16.mxu1 %v798_v1 }
  0x1a   : > { %697 = vmatpush3.bf16.msra.mxu0 %v759_v4 }
  0x1b   : > { %698 = vmatprep.subr.bf16.mxu0 %v798_v1 }
  0x1c   : > { %717 = vmatpush3.bf16.msra.mxu1 %v767_v14 }
  0x1d   : > { %718 = vmatprep.subr.bf16.mxu1 %v798_v1 }
  0x1e   : > { %699 = vmatpush3.bf16.msra.mxu0 %v760_v5 }
  0x1f   : > { %700 = vmatprep.subr.bf16.mxu0 %v798_v1 }
  0x20   : > { %719 = vmatpush3.bf16.msra.mxu1 %v768_v15 }
  0x21   : > { %720 = vmatprep.subr.bf16.mxu1 %v798_v1 }
  0x22   : > { %701 = vmatpush3.bf16.msra.mxu0 %v761_v6 }
  0x23   : > { %702 = vmatprep.subr.bf16.mxu0 %v798_v1 }
  0x24   : > { %721 = vmatpush3.bf16.msra.mxu1 %v769_v16 }
  0x25   : > { %722 = vmatprep.subr.bf16.mxu1 %v798_v1 }
  0x26   : > { %703 = vmatpush3.bf16.msra.mxu0 %v762_v7 }
  0x27   : > { %704 = vmatprep.subr.bf16.mxu0 %v798_v1 }
  0x28   : > { %723 = vmatpush3.bf16.msra.mxu1 %v770_v17 }
  0x29   : > { %724 = vmatprep.subr.bf16.mxu1 %v798_v1 }
  0x2a   : > { %705 = vmatpush3.bf16.msra.mxu0 %v763_v8 }
  0x2c   : > { %725 = vmatpush3.bf16.msra.mxu1 %v771_v18 }
  0x2d   : > { %707 = vmatmul.mubr.bf16.vlgmr.msra.gmra.mxu0 %v296_v10 }
  0xed   : > { %v402_v20 = vpop.f32.mrf.mxu0 }
  0xee   : > { %v403_v21 = vadd.f32 %v652_v19, %v402_v20 }
  0xef   : > { %v708_v22 = vpop.f32.mrf.mxu0 }
  0xf0   : > { %v408_v23 = vpack.c.bf16 %v403_v21, %v403_v21 }
  0xf1   : > { %v405_v24 = vpop.f32.mrf.mxu0 }
  0xf2   : > { %v410_v25 = vmul.bf16 %v408_v23, %v408_v23  ;;  %v409_v28 = vmul.bf16 1061961548, %v408_v23  ;;  %v414_v32 = vmul.bf16 1056980736, %v408_v23 }
  0xf3   : > { %v709_v26 = vpop.f32.mrf.mxu0 }
  0xf4   : > { %v411_v27 = vmul.bf16 1027030327, %v410_v25 }
  0xf6   : > { %v412_v29 = vadd.bf16 1065369472, %v411_v27 }
  0xf8   : > { %v413_v30 = vmul.bf16 %v412_v29, %v409_v28 }
  0xfa   : > { %772 = vtanh.bf16 %v413_v30 }
 0x108   : > { %v773_v31 = vpop.eup %772 }
 0x109   : > { %v416_v33 = vadd.bf16 1065369472, %v773_v31 }
 0x10b   : > { %v417_v34 = vmul.bf16 %v416_v33, %v414_v32 }
 0x10d   : > { %727 = vmatmul.mubr.bf16.vlgmr.msra.gmra.mxu1 %v417_v34 }
 0x1cd   : > { %v517_v36 = vpop.f32.mrf.mxu1 }
 0x1ce   : > { %v536_v37 = vadd.f32 %v669_v35, %v517_v36 }
 0x1cf   : > { %v728_v38 = vpop.f32.mrf.mxu1 }
 0x1d0   : > { %537 = vst [vmem:[%s284_s23] sm:$0xff] %v536_v37 }
 0x1d1   : > { %v520_v39 = vpop.f32.mrf.mxu1 }
 0x1d3   : > { %v729_v40 = vpop.f32.mrf.mxu1 }
 0x1d4 PF: > { %s15_s20 = sadd.s32 1, %s796_s20   ;;  %s934_s18 = smov %s792_s19 }
 0x1d5   : > { %p12_p5 = scmp.ge.s32.totalorder %s15_s20, 4   ;;  %s935_s19 = smov %s937_s21 }
 0x1d7   :  { %14 = sbr.rel (!%p12_p5) target bundleno = 2 (0x2), region = 87 }

</bundles_post_ra>
